<compile_context>
chip_gen: v7x
topology: tpu7x:2x2x1
jax: 0.10.0
libtpu: 0.0.40
codegen_flags: <defaults>
</compile_context>

<pallas_src>
import math

import jax
import jax.numpy as jnp
from jax.experimental import pallas as pl
from jax.experimental.pallas import tpu as pltpu


def _axial_rope_assemble_kernel(xsin_ref, xcos_ref, ysin_ref, ycos_ref, t_ref,
                                sin_ref, cos_ref):
    """Assemble one (Tw, H*dim) lane-dense slab for a fixed batch b.

    xsin_ref/xcos_ref : VMEM (1, Tw, D2)    sin/cos of x angles, pair-duplicated
    ysin_ref/ycos_ref : VMEM (1, 1, H*dim)  y halves flattened over j, zero in x lanes
    t_ref             : VMEM (D2, H*dim)    0/1 tiling matrix, T[c, j*dim + c] = 1
    sin_ref/cos_ref   : VMEM (1, Tw, H*dim) outputs (rows = x-index i, lanes = (j, c))
    """
    xsin = xsin_ref[0]            # (Tw, D2)
    xcos = xcos_ref[0]
    ysin = ysin_ref[0]            # (1, H*dim)
    ycos = ycos_ref[0]
    tmat = t_ref[...]             # (D2, H*dim)

    # MXU lane-tiling broadcast: places the x half in lanes (c % dim) < D2 of
    # every dim-group; exact (each output column has exactly one 1.0).
    x_sin = jnp.dot(xsin, tmat, preferred_element_type=jnp.float32)   # (Tw, H*dim)
    x_cos = jnp.dot(xcos, tmat, preferred_element_type=jnp.float32)

    # y half is constant over rows: sublane broadcast + VPU add (disjoint lanes,
    # both sides zero-padded, so the add is an exact assembly).
    sin_ref[0] = (x_sin + ysin).astype(sin_ref.dtype)
    cos_ref[0] = (x_cos + ycos).astype(cos_ref.dtype)


def _choose_tile_w(W, row_bytes, target_bytes=1 << 20):
    """Largest divisor of W (== W or multiple of 8) whose output block <= target."""
    divisors = [d for d in range(1, W + 1) if W % d == 0]
    cands = [d for d in divisors if d == W or d % 8 == 0] or divisors
    fitting = [d for d in cands if d * row_bytes <= target_bytes]
    return max(fitting) if fitting else min(cands)


def axial_rotary_embedding(coords, scales, freq_type="lucidrains"):
    """coords: [B, 2, H, W], scales: [dim//4] -> (sin, cos) each [B, W*H, dim]."""
    B, two, H, W = coords.shape
    assert two == 2, "coords must be [B, 2, H, W]"
    dtype = coords.dtype
    D4 = scales.shape[0]
    dim = 4 * D4
    D2 = dim // 2
    HD = H * dim
    itemsize = jnp.dtype(dtype).itemsize

    mult = jnp.asarray(math.pi if freq_type == "lucidrains" else 1.0, dtype)
    sc = scales.astype(dtype) * mult                         # (D4,)

    # --- tiny glue tables: transcendentals on the unique angles only ---------
    seq_x = coords[:, 0, 0, :]                               # (B, W)
    seq_y = coords[:, 1, :, 0]                               # (B, H)
    ang_x = seq_x[..., None] * sc                            # (B, W, D4)
    ang_y = seq_y[..., None] * sc                            # (B, H, D4)
    xsin = jnp.repeat(jnp.sin(ang_x), 2, axis=-1)            # (B, W, D2)
    xcos = jnp.repeat(jnp.cos(ang_x), 2, axis=-1)
    ysin_h = jnp.repeat(jnp.sin(ang_y), 2, axis=-1)          # (B, H, D2)
    ycos_h = jnp.repeat(jnp.cos(ang_y), 2, axis=-1)

    # y halves flattened over j into a lane-dense (1, H*dim) row per batch,
    # zero in the x lanes (c < D2 of each dim-group).
    zpad = jnp.zeros((B, H, D2), dtype)
    ysin = jnp.concatenate([zpad, ysin_h], axis=-1).reshape(B, 1, HD)
    ycos = jnp.concatenate([zpad, ycos_h], axis=-1).reshape(B, 1, HD)

    # 0/1 tiling matrix for the MXU broadcast of the x half.
    lane = jnp.arange(HD, dtype=jnp.int32)
    tmat = (lane[None, :] % dim == jnp.arange(D2, dtype=jnp.int32)[:, None]).astype(dtype)

    # --- tiling --------------------------------------------------------------
    Tw = _choose_tile_w(W, HD * itemsize)                    # ~<=1 MiB output block
    grid = (B, W // Tw)

    cost = pl.CostEstimate(
        flops=int(4 * B * W * D2 * HD + 2 * B * W * HD),
        transcendentals=0,
        bytes_accessed=int((2 * B * W * HD            # sin/cos outputs
                            + 2 * B * W * D2          # x tables
                            + 2 * B * HD              # y rows
                            + D2 * HD) * itemsize),   # tiling matrix
    )

    sin_flat, cos_flat = pl.pallas_call(
        _axial_rope_assemble_kernel,
        grid=grid,
        in_specs=[
            pl.BlockSpec((1, Tw, D2), lambda b, wi: (b, wi, 0)),   # x sin
            pl.BlockSpec((1, Tw, D2), lambda b, wi: (b, wi, 0)),   # x cos
            pl.BlockSpec((1, 1, HD), lambda b, wi: (b, 0, 0)),     # y sin row
            pl.BlockSpec((1, 1, HD), lambda b, wi: (b, 0, 0)),     # y cos row
            pl.BlockSpec((D2, HD), lambda b, wi: (0, 0)),          # tiling matrix
        ],
        out_specs=(
            pl.BlockSpec((1, Tw, HD), lambda b, wi: (b, wi, 0)),
            pl.BlockSpec((1, Tw, HD), lambda b, wi: (b, wi, 0)),
        ),
        out_shape=(
            jax.ShapeDtypeStruct((B, W, HD), dtype),
            jax.ShapeDtypeStruct((B, W, HD), dtype),
        ),
        compiler_params=pltpu.CompilerParams(
            dimension_semantics=("parallel", "parallel"),
            vmem_limit_bytes=48 * 1024 * 1024,   # safe on v7x (64 MiB physical)
        ),
        cost_estimate=cost,
    )(xsin, xcos, ysin, ycos, tmat)

    # Free reshape: (B, W, H*dim) and (B, W*H, dim) are the same row-major bytes.
    sin = sin_flat.reshape(B, W * H, dim)
    cos = cos_flat.reshape(B, W * H, dim)
    return sin, cos


def axial_rotary_embedding_reference(coords, scales, freq_type="lucidrains"):
    """Pure-JAX transcription of the PyTorch forward (for correctness check)."""
    seq_x = coords[:, 0, 0, :][..., None]     # (B, W, 1)
    seq_y = coords[:, 1, :, 0][..., None]     # (B, H, 1)
    sc = scales[None, None, :].astype(coords.dtype)
    if freq_type == "lucidrains":
        seq_x = seq_x * sc * jnp.pi
        seq_y = seq_y * sc * jnp.pi
    else:
        seq_x = seq_x * sc
        seq_y = seq_y * sc
    B, W, D4 = seq_x.shape
    H = seq_y.shape[1]
    x_sinu = jnp.broadcast_to(seq_x[:, :, None, :], (B, W, H, D4))
    y_sinu = jnp.broadcast_to(seq_y[:, None, :, :], (B, W, H, D4))
    sin = jnp.concatenate([jnp.sin(x_sinu), jnp.sin(y_sinu)], axis=-1)
    cos = jnp.concatenate([jnp.cos(x_sinu), jnp.cos(y_sinu)], axis=-1)
    sin = sin.reshape(B, W * H, 2 * D4)
    cos = cos.reshape(B, W * H, 2 * D4)
    sin = jnp.repeat(sin, 2, axis=-1)
    cos = jnp.repeat(cos, 2, axis=-1)
    return sin, cos


if __name__ == "__main__":
    # Module config (deterministic, in-script): dim=32, lucidrains freqs, max_freq=10
    dim = 32
    max_freq = 10.0
    B, H, W = 2, 16, 16

    # Buffer 'scales' exactly as in __init__: linspace(1, max_freq/2, dim//4)
    scales = jnp.linspace(1.0, max_freq / 2.0, dim // 4, dtype=jnp.float32)

    key = jax.random.PRNGKey(0)
    coords = jax.random.uniform(key, (B, 2, H, W), dtype=jnp.float32)

    sin, cos = axial_rotary_embedding(coords, scales, "lucidrains")
    sin, cos = jax.block_until_ready((sin, cos))

    sin_ref, cos_ref = axial_rotary_embedding_reference(coords, scales, "lucidrains")
    assert sin.shape == (B, W * H, dim) and cos.shape == (B, W * H, dim)
    assert jnp.allclose(sin, sin_ref, atol=1e-5, rtol=1e-5)
    assert jnp.allclose(cos, cos_ref, atol=1e-5, rtol=1e-5)

    print("KERNEL_OK")
</pallas_src>

<mosaic_0001>
module attributes {stable_mosaic.version = 11 : i64} {
  func.func @_axial_rope_assemble_kernel(%arg0: i32, %arg1: i32, %arg2: memref<1x16x16xf32, #tpu.memory_space<vmem>>, %arg3: memref<1x16x16xf32, #tpu.memory_space<vmem>>, %arg4: memref<1x1x512xf32, #tpu.memory_space<vmem>>, %arg5: memref<1x1x512xf32, #tpu.memory_space<vmem>>, %arg6: memref<16x512xf32, #tpu.memory_space<vmem>>, %arg7: memref<1x16x512xf32, #tpu.memory_space<vmem>>, %arg8: memref<1x16x512xf32, #tpu.memory_space<vmem>>) attributes {dimension_semantics = [#tpu.dimension_semantics<parallel>, #tpu.dimension_semantics<parallel>], iteration_bounds = array<i64: 2, 1>, scalar_prefetch = 0 : i64, scratch_operands = 0 : i64, tpu.core_type = #tpu.core_type<tc>, window_params = [{transform_indices = @transform_0, window_bounds = array<i64: 1, 16, 16>}, {transform_indices = @transform_1, window_bounds = array<i64: 1, 16, 16>}, {transform_indices = @transform_2, window_bounds = array<i64: 1, 1, 512>}, {transform_indices = @transform_3, window_bounds = array<i64: 1, 1, 512>}, {pipeline_mode = #tpu.pipeline_mode<synchronous>, transform_indices = @transform_4, window_bounds = array<i64: 16, 512>}, {transform_indices = @transform_5, window_bounds = array<i64: 1, 16, 512>}, {transform_indices = @transform_6, window_bounds = array<i64: 1, 16, 512>}]} {
    %c0 = arith.constant 0 : index
    %c0_0 = arith.constant 0 : index
    %c0_1 = arith.constant 0 : index
    %0 = vector.load %arg2[%c0, %c0_0, %c0_1] : memref<1x16x16xf32, #tpu.memory_space<vmem>>, vector<1x16x16xf32>
    %1 = vector.shape_cast %0 : vector<1x16x16xf32> to vector<16x16xf32>
    %c0_2 = arith.constant 0 : index
    %c0_3 = arith.constant 0 : index
    %c0_4 = arith.constant 0 : index
    %2 = vector.load %arg3[%c0_2, %c0_3, %c0_4] : memref<1x16x16xf32, #tpu.memory_space<vmem>>, vector<1x16x16xf32>
    %3 = vector.shape_cast %2 : vector<1x16x16xf32> to vector<16x16xf32>
    %c0_5 = arith.constant 0 : index
    %c0_6 = arith.constant 0 : index
    %c0_7 = arith.constant 0 : index
    %4 = vector.load %arg4[%c0_5, %c0_6, %c0_7] : memref<1x1x512xf32, #tpu.memory_space<vmem>>, vector<1x1x512xf32>
    %5 = vector.shape_cast %4 : vector<1x1x512xf32> to vector<1x512xf32>
    %c0_8 = arith.constant 0 : index
    %c0_9 = arith.constant 0 : index
    %c0_10 = arith.constant 0 : index
    %6 = vector.load %arg5[%c0_8, %c0_9, %c0_10] : memref<1x1x512xf32, #tpu.memory_space<vmem>>, vector<1x1x512xf32>
    %7 = vector.shape_cast %6 : vector<1x1x512xf32> to vector<1x512xf32>
    %c0_11 = arith.constant 0 : index
    %c0_12 = arith.constant 0 : index
    %8 = vector.load %arg6[%c0_11, %c0_12] : memref<16x512xf32, #tpu.memory_space<vmem>>, vector<16x512xf32>
    %cst = arith.constant dense<0.000000e+00> : vector<16x512xf32>
    %9 = tpu.matmul %1, %8, %cst {dimension_numbers = #tpu.dot_dimension_numbers<[1], [0], [0], [1], [0, 0, 1, 1], [], []>} : vector<16x16xf32>, vector<16x512xf32>, vector<16x512xf32> -> vector<16x512xf32>
    %cst_13 = arith.constant dense<0.000000e+00> : vector<16x512xf32>
    %10 = tpu.matmul %3, %8, %cst_13 {dimension_numbers = #tpu.dot_dimension_numbers<[1], [0], [0], [1], [0, 0, 1, 1], [], []>} : vector<16x16xf32>, vector<16x512xf32>, vector<16x512xf32> -> vector<16x512xf32>
    %11 = vector.broadcast %5 : vector<1x512xf32> to vector<16x512xf32>
    %12 = arith.addf %9, %11 : vector<16x512xf32>
    %c0_14 = arith.constant 0 : index
    %c0_15 = arith.constant 0 : index
    %c0_16 = arith.constant 0 : index
    %13 = vector.load %arg7[%c0_14, %c0_15, %c0_16] : memref<1x16x512xf32, #tpu.memory_space<vmem>>, vector<1x16x512xf32>
    %14 = vector.shape_cast %13 : vector<1x16x512xf32> to vector<16x512xf32>
    %15 = vector.shape_cast %12 : vector<16x512xf32> to vector<1x16x512xf32>
    tpu.vector_store %arg7[%c0_14, %c0_15, %c0_16], %15 {strides = array<i32>} : memref<1x16x512xf32, #tpu.memory_space<vmem>>, vector<1x16x512xf32>,
    %16 = vector.broadcast %7 : vector<1x512xf32> to vector<16x512xf32>
    %17 = arith.addf %10, %16 : vector<16x512xf32>
    %c0_17 = arith.constant 0 : index
    %c0_18 = arith.constant 0 : index
    %c0_19 = arith.constant 0 : index
    %18 = vector.load %arg8[%c0_17, %c0_18, %c0_19] : memref<1x16x512xf32, #tpu.memory_space<vmem>>, vector<1x16x512xf32>
    %19 = vector.shape_cast %18 : vector<1x16x512xf32> to vector<16x512xf32>
    %20 = vector.shape_cast %17 : vector<16x512xf32> to vector<1x16x512xf32>
    tpu.vector_store %arg8[%c0_17, %c0_18, %c0_19], %20 {strides = array<i32>} : memref<1x16x512xf32, #tpu.memory_space<vmem>>, vector<1x16x512xf32>,
    return
  }
  func.func @transform_0(%arg0: i32, %arg1: i32) -> (i32, i32, i32) {
    %c0_i32 = arith.constant 0 : i32
    %c0_i32_0 = arith.constant 0 : i32
    return %arg0, %arg1, %c0_i32 : i32, i32, i32
  }
  func.func @transform_1(%arg0: i32, %arg1: i32) -> (i32, i32, i32) {
    %c0_i32 = arith.constant 0 : i32
    %c0_i32_0 = arith.constant 0 : i32
    return %arg0, %arg1, %c0_i32 : i32, i32, i32
  }
  func.func @transform_2(%arg0: i32, %arg1: i32) -> (i32, i32, i32) {
    %c0_i32 = arith.constant 0 : i32
    %c0_i32_0 = arith.constant 0 : i32
    %c0_i32_1 = arith.constant 0 : i32
    return %arg0, %c0_i32, %c0_i32_0 : i32, i32, i32
  }
  func.func @transform_3(%arg0: i32, %arg1: i32) -> (i32, i32, i32) {
    %c0_i32 = arith.constant 0 : i32
    %c0_i32_0 = arith.constant 0 : i32
    %c0_i32_1 = arith.constant 0 : i32
    return %arg0, %c0_i32, %c0_i32_0 : i32, i32, i32
  }
  func.func @transform_4(%arg0: i32, %arg1: i32) -> (i32, i32) {
    %c0_i32 = arith.constant 0 : i32
    %c0_i32_0 = arith.constant 0 : i32
    %c0_i32_1 = arith.constant 0 : i32
    return %c0_i32, %c0_i32_0 : i32, i32
  }
  func.func @transform_5(%arg0: i32, %arg1: i32) -> (i32, i32, i32) {
    %c0_i32 = arith.constant 0 : i32
    %c0_i32_0 = arith.constant 0 : i32
    return %arg0, %arg1, %c0_i32 : i32, i32, i32
  }
  func.func @transform_6(%arg0: i32, %arg1: i32) -> (i32, i32, i32) {
    %c0_i32 = arith.constant 0 : i32
    %c0_i32_0 = arith.constant 0 : i32
    return %arg0, %arg1, %c0_i32 : i32, i32, i32
  }
}

</mosaic_0001>

<bundles_post_ra>
// kernel: tpu_custom_call.1
= control target key start
LH: loop header
LB: loop body
LE: loop exit
PB: predicated region body
PF: predicated region fallthrough
CT: control target
= control target key end

     0   :  { %s1858_s0 = inlined_call_operand.hbm [shape: f32[2,16,16], index: 0, kind: input, shape index: {}]   ;;  %s1859_s1 = inlined_call_operand.hbm [shape: f32[2,16,16], index: 1, kind: input, shape index: {}]   ;;  %s1860_s2 = inlined_call_operand.hbm [shape: f32[2,1,512], index: 2, kind: input, shape index: {}]   ;;  %s1861_s3 = inlined_call_operand.vmem [shape: f32[2,1,512], index: 3, kind: input, shape index: {}]   ;;  %s1862_s4 = inlined_call_operand.hbm [shape: f32[16,512], index: 4, kind: input, shape index: {}]   ;;  %s1863_s5 = inlined_call_operand.hbm [shape: f32[2,16,512], index: 5, kind: output, shape index: {0}]   ;;  %s1864_s6 = inlined_call_operand.hbm [shape: f32[2,16,512], index: 6, kind: output, shape index: {1}]  }
   0x1   :  { %1884 = sst [smem:[#allocation24_spill]] %s1859_s1 }
   0x2   :  { %1885 = sst [smem:[#allocation25_spill]] %s1864_s6 }
   0x3   :  { %12 = vsyncpa [#allocation3], 0 }
   0x4   :  { %14 = vsyncpa [#allocation3 + $0x1], 0 }
   0x5   :  { %15 = vsyncpa [#allocation6], 0 }
   0x6   :  { %17 = vsyncpa [#allocation6 + $0x1], 0 }
   0x7   :  { %18 = vsyncpa [#allocation9], 0 }
   0x8   :  { %19 = vsyncpa [#allocation4], 0 }
   0x9   :  { %21 = vsyncpa [#allocation4 + $0x1], 0 }
   0xa   :  { %22 = vsyncpa [#allocation12], 0 }
   0xb   :  { %24 = vsyncpa [#allocation12 + $0x1], 0  ;;  %s1484_s21 = smov 0   ;;  %s1486_s22 = smov 0  }
   0xc   :  { %s1488_s23 = smov 0   ;;  %s1490_s24 = smov 0  }
   0xd   :  { %s1492_s25 = smov 0   ;;  %s1494_s26 = smov 0  }
   0xe LB: > { %1886 = sst [smem:[#allocation18_spill]] %s1414_s21  ;;  %s42_s27 = sadd.s32 1, %s1430_s25  ;;  %s1434_s26 = sphi %s1494_s26, %s30_s26   ;;  %s1430_s25 = sphi %s1492_s25, %s1925_s25   ;;  %s1426_s24 = sphi %s1490_s24, %s1924_s24   ;;  %s1422_s23 = sphi %s1488_s23, %s1920_s23   ;;  %s1418_s22 = sphi %s1486_s22, %s1923_s22   ;;  %s1414_s21 = sphi %s1484_s21, %s1922_s21  }
   0xf   : > { %1887 = sst [smem:[#allocation19_spill]] %s1422_s23  ;;  %s51_s28 = sadd.s32 1, %s1422_s23 }
  0x10   : > { %1888 = sst [smem:[#allocation20_spill]] %s1434_s26  ;;  %p44_p0 = scmp.ge.s32.totalorder %s42_s27, 2 }
  0x11   : > { %p1865_p1 = scmp.ne.s32.totalorder %s1422_s23, %s1418_s22  ;;  %p59_p2 = scmp.eq.s32.totalorder %s1434_s26, 0 }
  0x12   : > { %s1927_s27 = smov (%p44_p0, %s42_s27), 0  ;;  %p1135_p5 = scmp.lt.s32.totalorder %s1434_s26, 2 }
  0x13   : > { %1889 = sst [smem:[#allocation21_spill]] %s1927_s27  ;;  %p60_p4 = por %p59_p2, %p1865_p1 }
  0x14   : > { %s46_s29 = ssub.s32 %s1430_s25, %s1927_s27  ;;  %s1529_s30 = sand.u32 1, %s1422_s23  }
  0x15   : > { %p49_p6 = scmp.eq.s32.totalorder %s46_s29, 0  ;;  %s1868_s7 = sshll.u32 %s1529_s30, 4 }
  0x16   : > { %s1078_s8 = sshll.u32 %s1430_s25, 8  ;;  %p1533_p7 = pnand %p1135_p5, %p60_p4 }
  0x17   : > { %s1538_s10 = scalar_select %p49_p6, %s1422_s23, %s51_s28  }
  0x18   : > { %s1890_s9 = scalar_select %p1533_p7, 1, 0 }
  0x19   : > { %1891 = sst [smem:[#allocation22_spill]] %s1538_s10  ;;  %s281_s11 = sand.u32 1, %s1434_s26  }
  0x1a   : > { %s1892_s1 = sld [smem:[#allocation24_spill]]  ;;  %s285_s15 = scalar_lea.vmem [#allocation5], %s1868_s7 }
  0x1b   : > { %s294_s16 = sshll.u32 %s285_s15, 4  ;;  %s1552_s17 = scalar_lea.sflag [#allocation6], %s281_s11  ;;  %s1550_s16 = int_to_ptr.vmem [resolvable:$true] %s294_s16 }
  0x1c   : > { %p1558_p9 = pneg %p1533_p7 }
  0x1e   : > { %s1893_s19 = scalar_select %p1558_p9, 1, 0 }
  0x20   : > { %s1546_s14 = scalar_lea.hbm %s1892_s1, %s1078_s8  ;;  %s1199_s29 = scalar_lea.hbm %s1892_s1, 512 }
  0x21   : > { %s1194_s18 = scalar_lea.hbm %s1546_s14, 256  ;;  %p1200_p12 = scmp.lt.u32.totalorder %s1546_s14, %s1892_s1 }
  0x22   : > { %p1195_p8 = scmp.ne.s32.totalorder %s1546_s14, %s1194_s18  ;;  %p1201_p13 = scmp.lt.u32.totalorder %s1199_s29, %s1194_s18 }
  0x23   : > { %p1203_p2 = scmp.lt.u32.totalorder %s1194_s18, %s1546_s14 }
  0x24   : > { %p1197_p10 = pnand %p1558_p9, %p1195_p8  ;;  %p1202_p0 = por %p1201_p13, %p1200_p12 }
  0x26   : > { %p1198_p11 = pneg %p1197_p10  ;;  %p1204_p4 = por %p1203_p2, %p1202_p0 }
  0x28   : > { %p1205_p5 = pnand %p1204_p4, %p1198_p11 }
  0x2a   : > { %1208 = shalt.err (!%p1205_p5)
}
  0x2b   : > { %s1209_s11 = scalar_lea.vmem %s1550_s16, 256  ;;  %s1436_s15 = smov [#allocation5]  }
  0x2c   : > { %p1210_p6 = scmp.ne.s32.totalorder %s1550_s16, %s1209_s11  ;;  %s1214_s20 = sshll.u32 %s1436_s15, 4  ;;  %s1215_s20 = int_to_ptr.vmem [resolvable:$false] %s1214_s20 }
  0x2d   : > { %s1216_s28 = scalar_lea.vmem %s1215_s20, 512  ;;  %p1217_p3 = scmp.lt.s32.totalorder %s1550_s16, %s1215_s20 }
  0x2e   : > { %p1212_p8 = pnand %p1210_p6, %p1558_p9  ;;  %p1218_p1 = scmp.lt.s32.totalorder %s1216_s28, %s1209_s11 }
  0x30   : > { %p1213_p10 = pneg %p1212_p8  ;;  %p1219_p12 = por %p1218_p1, %p1217_p3 }
  0x32   : > { %p1220_p13 = pnand %p1219_p12, %p1213_p10 }
  0x34   : > { %1223 = shalt.err (!%p1220_p13)
}
  0x35   : > { %s1866_s18 = smov 128   ;;  %s1867_s29 = smov 8  }
  0x36   : > { %1123 = dma.hbm_to_vmem [thread:$0]  (!%p1533_p7), %s1546_s14, 256, %s1550_s16, %s1552_s17, %s1866_s18, %s1866_s18, %s1867_s29  }
  0x37   : > { %s1586_s12 = sadd.s32 4294967295, %s1434_s26   ;;  %s1041_s13 = sadd.s32 4294967294, %s1434_s26  }
  0x38   : > { %p64_p1 = scmp.ne.s32.totalorder %s1418_s22, %s1414_s21  ;;  %p1876_p3 = scmp.eq.s32.totalorder %s1586_s12, 0 }
  0x39   : > { %p191_p11 = scmp.eq.s32.totalorder %s1586_s12, 1  ;;  %p197_p0 = scmp.eq.s32.totalorder %s1041_s13, 1 }
  0x3a   : > { %p1042_p2 = scmp.ge.s32.totalorder %s1434_s26, 1  ;;  %p1596_p4 = por %p1876_p3, %p64_p1 }
  0x3b   : > { %p1895_p5 = scmp.ne.s32.totalorder %s1422_s23, %s1418_s22  ;;  %p1607_p8 = por %p197_p0, %p64_p1 }
  0x3c   : > { %s1894_s11 = scalar_select %p1596_p4, 1, 0 }
  0x3d   : > { %p1603_p6 = por %p191_p11, %p1895_p5  ;;  %p232_p10 = scmp.lt.s32.totalorder %s1434_s26, 3 }
  0x3e   : > { %s1897_s16 = scalar_select %p1607_p8, 1, 0 }
  0x3f   : > { %s1896_s14 = scalar_select %p1603_p6, 1, 0 }
  0x40   : > { %1898 = sst [smem:[#allocation23_spill]] %s1897_s16  ;;  %p1612_p12 = pnand %p1042_p2, %p232_p10 }
  0x41   : > { %s1439_s20 = smov [#allocation8]   ;;  %s1631_s7 = scalar_lea.hbm %s1858_s0, %s1078_s8 }
  0x42   : > { %s1899_s15 = scalar_select %p1612_p12, 1, 0 }
  0x43   : > { %s244_s28 = sshll.u32 %s1439_s20, 4  ;;  %p1113_p13 = pneg %p1612_p12  ;;  %s1616_s28 = int_to_ptr.vmem [resolvable:$true] %s244_s28 }
  0x44   : > { %s1901_s1 = sshll.u32 %s1529_s30, 4  ;;  %s1224_s16 = scalar_lea.hbm %s1862_s4, 1024 }
  0x45   : > { %p1622_p11 = pnand %p1113_p13, %p1876_p3  ;;  %s262_s27 = scalar_lea.vmem [#allocation2], %s1901_s1 }
  0x46   : > { %s271_s10 = sshll.u32 %s262_s27, 4  ;;  %p1225_p1 = scmp.ne.s32.totalorder %s1862_s4, %s1224_s16  ;;  %s1636_s10 = int_to_ptr.vmem [resolvable:$true] %s271_s10 }
  0x47   : > { %p1226_p0 = pneg %p1622_p11  ;;  %p1231_p10 = scmp.lt.u32.totalorder %s1224_s16, %s1862_s4 }
  0x49   : > { %p1227_p2 = pnand %p1226_p0, %p1225_p1 }
  0x4b   : > { %p1228_p5 = pneg %p1227_p2 }
  0x4d   : > { %p1233_p13 = pnand %p1231_p10, %p1228_p5 }
  0x4f   : > { %1236 = shalt.err (!%p1233_p13)
}
  0x50   : > { %s1237_s1 = scalar_lea.vmem %s1616_s28, 1024  ;;  %p1245_p4 = scmp.lt.s32.totalorder %s1616_s28, %s1616_s28 }
  0x51   : > { %p1238_p3 = scmp.ne.s32.totalorder %s1616_s28, %s1237_s1  ;;  %p1246_p12 = scmp.lt.s32.totalorder %s1237_s1, %s1237_s1 }
  0x53   : > { %p1240_p8 = pnand %p1238_p3, %p1226_p0  ;;  %p1247_p7 = por %p1246_p12, %p1245_p4 }
  0x55   : > { %p1241_p6 = pneg %p1240_p8 }
  0x57   : > { %p1248_p9 = pnand %p1247_p7, %p1241_p6 }
  0x59   : > { %1251 = shalt.err (!%p1248_p9)
}
  0x5a   : > { %s1440_s6 = smov 512   ;;  %s1441_s21 = smov 32  }
  0x5b   : > { %1116 = dma.hbm_to_vmem [thread:$0]  (!%p1622_p11), %s1862_s4, 1024, %s1616_s28, [#allocation9], %s1440_s6, %s1440_s6, %s1441_s21  }
  0x5c   : > { %s259_s27 = scalar_lea.sflag [#allocation3], %s1529_s30  ;;  %s1252_s29 = scalar_lea.hbm %s1631_s7, 256 }
  0x5d   : > { %p1253_p3 = scmp.ne.s32.totalorder %s1631_s7, %s1252_s29  ;;  %p1902_p7 = scmp.ne.s32.totalorder %s1893_s19, 0 }
  0x5e   : > { %s1257_s18 = scalar_lea.hbm %s1858_s0, 512  ;;  %p1258_p6 = scmp.lt.u32.totalorder %s1631_s7, %s1858_s0 }
  0x5f   : > { %p1255_p9 = pnand %p1253_p3, %p1902_p7  ;;  %p1259_p8 = scmp.lt.u32.totalorder %s1257_s18, %s1252_s29 }
  0x60   : > { %p1261_p1 = scmp.lt.u32.totalorder %s1252_s29, %s1631_s7 }
  0x61   : > { %p1256_p4 = pneg %p1255_p9  ;;  %p1260_p12 = por %p1259_p8, %p1258_p6 }
  0x63   : > { %p1262_p0 = por %p1261_p1, %p1260_p12 }
  0x65   : > { %p1263_p2 = pnand %p1262_p0, %p1256_p4 }
  0x67   : > { %1266 = shalt.err (!%p1263_p2)
}
  0x68   : > { %s1267_s28 = scalar_lea.vmem %s1636_s10, 256  ;;  %s1442_s13 = smov [#allocation2]  }
  0x69   : > { %p1268_p11 = scmp.ne.s32.totalorder %s1636_s10, %s1267_s28  ;;  %s1272_s6 = sshll.u32 %s1442_s13, 4  ;;  %s1273_s6 = int_to_ptr.vmem [resolvable:$false] %s1272_s6 }
  0x6a   : > { %s1274_s20 = scalar_lea.vmem %s1273_s6, 512  ;;  %p1275_p13 = scmp.lt.s32.totalorder %s1636_s10, %s1273_s6 }
  0x6b   : > { %p1270_p5 = pnand %p1268_p11, %p1902_p7  ;;  %p1276_p3 = scmp.lt.s32.totalorder %s1274_s20, %s1267_s28 }
  0x6d   : > { %p1271_p10 = pneg %p1270_p5  ;;  %p1277_p9 = por %p1276_p3, %p1275_p13 }
  0x6f   : > { %p1278_p6 = pnand %p1277_p9, %p1271_p10 }
  0x71   : > { %1281 = shalt.err (!%p1278_p6)
}
  0x72   : > { %p1903_p4 = scmp.ne.s32.totalorder %s1890_s9, 0  ;;  %s1904_s21 = smov 8  }
  0x73   : > { %s1905_s23 = smov 128   ;;  %s1080_s26 = sshll.u32 %s1430_s25, 6 }
  0x74   : > { %1120 = dma.hbm_to_vmem [thread:$0]  (!%p1903_p4), %s1631_s7, 256, %s1636_s10, %s259_s27, %s1905_s23, %s1905_s23, %s1904_s21  }
  0x75   : > { %s1690_s8 = scalar_lea.hbm %s1860_s2, %s1080_s26  ;;  %s1906_s18 = sshll.u32 %s1529_s30, 2 }
  0x76   : > { %s308_s1 = scalar_lea.vmem [#allocation7], %s1906_s18  ;;  %s1282_s13 = scalar_lea.hbm %s1690_s8, 64 }
  0x77   : > { %s316_s28 = sshll.u32 %s308_s1, 4  ;;  %p1283_p8 = scmp.ne.s32.totalorder %s1690_s8, %s1282_s13  ;;  %s317_s28 = int_to_ptr.vmem [resolvable:$true] %s316_s28 }
  0x78   : > { %s1287_s27 = scalar_lea.hbm %s1860_s2, 128  ;;  %p1288_p0 = scmp.lt.u32.totalorder %s1690_s8, %s1860_s2 }
  0x79   : > { %p1285_p12 = pnand %p1283_p8, %p1902_p7  ;;  %p1289_p2 = scmp.lt.u32.totalorder %s1287_s27, %s1282_s13 }
  0x7a   : > { %p1291_p5 = scmp.lt.u32.totalorder %s1282_s13, %s1690_s8 }
  0x7b   : > { %p1286_p1 = pneg %p1285_p12  ;;  %p1290_p11 = por %p1289_p2, %p1288_p0 }
  0x7d   : > { %p1292_p10 = por %p1291_p5, %p1290_p11 }
  0x7f   : > { %p1293_p13 = pnand %p1292_p10, %p1286_p1 }
  0x81   : > { %1296 = shalt.err (!%p1293_p13)
}
  0x82   : > { %s1297_s30 = scalar_lea.vmem %s317_s28, 64  ;;  %s1443_s21 = smov [#allocation7]  }
  0x83   : > { %p1298_p3 = scmp.ne.s32.totalorder %s317_s28, %s1297_s30  ;;  %s1302_s23 = sshll.u32 %s1443_s21, 4  ;;  %s1303_s23 = int_to_ptr.vmem [resolvable:$false] %s1302_s23 }
  0x84   : > { %s1304_s26 = scalar_lea.vmem %s1303_s23, 128  ;;  %p1305_p8 = scmp.lt.s32.totalorder %s317_s28, %s1303_s23 }
  0x85   : > { %p1300_p9 = pnand %p1298_p3, %p1902_p7  ;;  %p1306_p12 = scmp.lt.s32.totalorder %s1304_s26, %s1297_s30 }
  0x87   : > { %p1301_p6 = pneg %p1300_p9  ;;  %p1307_p4 = por %p1306_p12, %p1305_p8 }
  0x89   : > { %p1308_p0 = pnand %p1307_p4, %p1301_p6 }
  0x8b   : > { %1311 = shalt.err (!%p1308_p0)
}
  0x8c   : > { %p1907_p2 = scmp.ne.s32.totalorder %s1890_s9, 0  ;;  %p1908_p1 = scmp.ne.s32.totalorder %s1899_s15, 0 }
  0x8d   : > { %s1715_s19 = sand.u32 (!%p1908_p1), 1, %s1418_s22   ;;  %p1909_p7 = scmp.ne.s32.totalorder (!%p1908_p1), %s1894_s11, 0 }
  0x8e   : > { %1126 = dma.hbm_to_vmem [thread:$0]  (!%p1907_p2), %s1690_s8, 64, %s317_s28, %s1552_s17  }
  0x8f   : > { %332 = sbr.rel (%p1908_p1) target bundleno = 425 (0x1a9), region = 40  ;;  %s1055_s29 = sshll.u32 (!%p1908_p1), %s1715_s19, 4 }
  0x90   : > { %s335_s16 = scalar_lea.sflag (!%p1908_p1), [#allocation3], %s1715_s19  ;;  %s1719_s18 = scalar_lea.vmem (!%p1908_p1), [#allocation2], %s1055_s29 }
  0x96   : > { %1393 = dma.done.wait (%p1909_p7), %s335_s16, 256  }
  0x97   : > { %1395 = vsyncadd (%p1909_p7), %s335_s16, 4294967040  ;;  %s343_s9 = sand.u32 1, %s1586_s12   ;;  %s1726_s15 = scalar_lea.vmem [#allocation5], %s1055_s29 }
  0x98   : > { %s344_s17 = scalar_lea.sflag [#allocation6], %s343_s9 }
  0x99   : > { %1397 = dma.done.wait (%p1909_p7), %s344_s17, 320  }
  0x9a   : > { %1399 = vsyncadd (%p1909_p7), %s344_s17, 4294966976  ;;  %s1057_s8 = sshll.u32 %s1715_s19, 2  ;;  %p1910_p4 = scmp.eq.s32.totalorder %s1586_s12, 0 }
  0x9b   : > { %s1733_s1 = scalar_lea.vmem [#allocation7], %s1057_s8 }
  0x9c   : > { %1401 = dma.done.wait (%p1910_p4), [#allocation9], 1024   ;;  %p1911_p11 = pmov %p1910_p4 }
  0x9d   : > { %v1444_v0 = vmov 0.0   ;;  %v423_v1 = vld [vmem:[#allocation8 + $0x8] sm:$0xff]  ;;  %v425_v3 = vld [vmem:[#allocation8 + $0x18] sm:$0xff]  ;;  %v422_v6 = vld [vmem:[#allocation8] sm:$0xff]  ;;  %vm451_vm0 = vcmask 130048   ;;  %v431_v17 = vlaneseq  ;;  %p410_p5 = scmp.lt.s32.totalorder %s1426_s24, 1 }
  0x9e   : > { %1403 = vsyncadd (%p1911_p11), [#allocation9], 4294966272  ;;  %522 = vmatprep.mubr.f32.mxu0 %v1444_v0  ;;  %599 = vmatprep.mubr.f32.mxu1 %v1444_v0  ;;  %v427_v2 = vld [vmem:[#allocation8 + $0x28] sm:$0xff]  ;;  %v429_v5 = vld [vmem:[#allocation8 + $0x38] sm:$0xff]  ;;  %s1059_s28 = sshll.u32 %s1715_s19, 6  ;;  %s1081_s20 = sshll.u32 %s1426_s24, 10 }
  0x9f   : > { %v1083_v4 = vpack.c.bf16 %v427_v2, %v423_v1  ;;  %v426_v7 = vld [vmem:[#allocation8 + $0x20] sm:$0xff]  ;;  %v1087_v8 = vpack.c.bf16 %v429_v5, %v425_v3  ;;  %v424_v10 = vld [vmem:[#allocation8 + $0x10] sm:$0xff]  ;;  %v416_v13 = vld [vmem:[%s1719_s18] sm:$0xff]  ;;  %v432_v18 = vshrl.u32 %v431_v17, 7  ;;  %s411_s12 = scalar_select %p410_p5, %s1426_s24, 1 }
  0xa0   : > { %v1085_v9 = vpack.c.bf16 %v426_v7, %v422_v6  ;;  %v428_v11 = vld [vmem:[#allocation8 + $0x30] sm:$0xff]  ;;  %v418_v15 = vld [vmem:[%s1726_s15] sm:$0xff]  ;;  %s400_s27 = scalar_lea.vmem [#allocation10], %s1059_s28  ;;  %s1768_s23 = scalar_lea.hbm %s1863_s5, %s1081_s20 }
  0xa1   : > { %1084 = vmatprep.subr.bf16.mxu0 %v1083_v4  ;;  %v1089_v12 = vpack.c.bf16 %v428_v11, %v424_v10  ;;  %1088 = vmatprep.subr.bf16.mxu1 %v1087_v8  ;;  %v417_v14 = vld [vmem:[%s1719_s18 + $0x8] sm:$0xff]  ;;  %v433_v19 = vsub.s32 0, %v432_v18  ;;  %v420_v20 = vld [vmem:[%s1733_s1] sm:$0xf]  ;;  %v441_v21 = vsub.s32 2, %v432_v18  ;;  %v437_v22 = vsub.s32 1, %v432_v18 }
  0xa2   : > { %1086 = vmatpush1.bf16.msra.mxu0 %v1085_v9  ;;  %v419_v16 = vld [vmem:[%s1726_s15 + $0x8] sm:$0xff]  ;;  %v445_v23 = vsub.s32 3, %v432_v18  ;;  %s1061_s11 = sshll.u32 %s411_s12, 2  ;;  %s831_s6 = sshll.u32 %s400_s27, 4  ;;  %s1761_s6 = int_to_ptr.vmem [resolvable:$true] %s831_s6 }
  0xa3   : > { %1090 = vmatpush1.bf16.msra.mxu1 %v1089_v12  ;;  %1092 = vmatprep.subr.bf16.mxu0 %v1083_v4  ;;  %v434_v24 = vrot.slane %v420_v20, %v433_v19  ;;  %v442_v25 = vrot.slane %v420_v20, %v441_v21  ;;  %v438_v26 = vrot.slane %v420_v20, %v437_v22  ;;  %s413_s10 = scalar_lea.vmem %s1861_s3, %s1061_s11  ;;  %s810_s26 = scalar_lea.sflag [#allocation4], %s1715_s19 }
  0xa4   : > { %1096 = vmatprep.subr.bf16.mxu1 %v1087_v8  ;;  %v446_v27 = vrot.slane %v420_v20, %v445_v23  ;;  %v421_v35 = vld [vmem:[%s413_s10] sm:$0xf]  ;;  %s1312_s29 = scalar_lea.vmem %s1761_s6, 1024  ;;  %p1912_p13 = scmp.ne.s32.totalorder %s1896_s14, 0 }
  0xa5   : > { %1062 = vmatmul.mubr.msk.f32.vlgmr.msra.gmra.mrb[0].mxu0 %vm451_vm0, %v416_v13  ;;  %v624_v41 = vrot.slane %v421_v35, %v433_v19  ;;  %v632_v45 = vrot.slane %v421_v35, %v441_v21  ;;  %v628_v46 = vrot.slane %v421_v35, %v437_v22  ;;  %v636_v48 = vrot.slane %v421_v35, %v445_v23  ;;  %p1313_p10 = scmp.ne.s32.totalorder %s1761_s6, %s1312_s29  ;;  %s1445_s16 = smov [#allocation10]  }
  0xa6   : > { %1064 = vmatmul.mubr.msk.f32.vlgmr.msra.gmra.mrb[0].mxu1 %vm451_vm0, %v416_v13  ;;  %1094 = vmatpush1.bf16.msra.mxu0 %v1085_v9  ;;  %s1316_s18 = sshll.u32 %s1445_s16, 4  ;;  %s1317_s18 = int_to_ptr.vmem [resolvable:$false] %s1316_s18 }
  0xa7   : > { %1098 = vmatpush1.bf16.msra.mxu1 %v1089_v12  ;;  %528 = vmatprep.mubr.f32.mxu0 %v1444_v0  ;;  %p1314_p3 = pnand %p1313_p10, %p1912_p13  ;;  %s1318_s9 = scalar_lea.vmem %s1317_s18, 2048 }
  0xa8   : > { %605 = vmatprep.mubr.f32.mxu1 %v1444_v0  ;;  %p1319_p6 = scmp.lt.s32.totalorder %s1761_s6, %s1317_s18  ;;  %p1320_p8 = scmp.lt.s32.totalorder %s1318_s9, %s1312_s29 }
  0xa9   : > { %1063 = vmatmul.mubr.msk.f32.gmra.mrb[2].mxu0 %vm451_vm0, %v417_v14  ;;  %p1315_p9 = pneg %p1314_p3 }
  0xaa   : > { %1065 = vmatmul.mubr.msk.f32.gmra.mrb[2].mxu1 %vm451_vm0, %v417_v14  ;;  %711 = vmatprep.mubr.f32.mxu0 %v1444_v0  ;;  %p1321_p12 = por %p1320_p8, %p1319_p6 }
  0xab   : > { %788 = vmatprep.mubr.f32.mxu1 %v1444_v0 }
  0xac   : > { %p1322_p0 = pnand %p1321_p12, %p1315_p9 }
  0xad   : > { %1066 = vmatmul.mubr.msk.f32.vlgmr.msra.gmra.mrb[4].mxu0 %vm451_vm0, %v418_v15 }
  0xae   : > { %1068 = vmatmul.mubr.msk.f32.vlgmr.msra.gmra.mrb[4].mxu1 %vm451_vm0, %v418_v15  ;;  %717 = vmatprep.mubr.f32.mxu0 %v1444_v0 }
  0xaf   : > { %794 = vmatprep.mubr.f32.mxu1 %v1444_v0 }
  0xb1   : > { %1067 = vmatmul.mubr.msk.f32.gmra.mrb[6].mxu0 %vm451_vm0, %v419_v16 }
  0xb2   : > { %1069 = vmatmul.mubr.msk.f32.gmra.mrb[6].mxu1 %vm451_vm0, %v419_v16 }
 0x178   : > { %v524_v28 = vpop.f32.mrb[0].mxu0 }
 0x179   : > { %v525_v29 = vadd.f32 %v524_v28, %v434_v24  ;;  %v601_v30 = vpop.f32.mrb[0].mxu1  ;;  %v526_v31 = vpop.f32.mrb[1].mxu0 }
 0x17a   : > { %v602_v32 = vadd.f32 %v601_v30, %v442_v25  ;;  %v527_v33 = vadd.f32 %v526_v31, %v438_v26  ;;  %v603_v34 = vpop.f32.mrb[1].mxu1 }
 0x17b   : > { %612 = vst [vmem:[%s400_s27] sm:$0xff] %v525_v29  ;;  %v604_v36 = vadd.f32 %v603_v34, %v446_v27 }
 0x17c   : > { %614 = vst [vmem:[%s400_s27 + $0x10] sm:$0xff] %v602_v32  ;;  %613 = vst [vmem:[%s400_s27 + $0x8] sm:$0xff] %v527_v33  ;;  %v530_v37 = vpop.f32.mrb[2].mxu0 }
 0x17d   : > { %615 = vst [vmem:[%s400_s27 + $0x18] sm:$0xff] %v604_v36  ;;  %v531_v38 = vadd.f32 %v530_v37, %v434_v24  ;;  %v607_v39 = vpop.f32.mrb[2].mxu1  ;;  %v532_v40 = vpop.f32.mrb[3].mxu0 }
 0x17e   : > { %v608_v42 = vadd.f32 %v607_v39, %v442_v25  ;;  %v533_v43 = vadd.f32 %v532_v40, %v438_v26  ;;  %v609_v44 = vpop.f32.mrb[3].mxu1 }
 0x17f   : > { %616 = vst [vmem:[%s400_s27 + $0x20] sm:$0xff] %v531_v38  ;;  %v610_v47 = vadd.f32 %v609_v44, %v446_v27 }
 0x180   : > { %618 = vst [vmem:[%s400_s27 + $0x30] sm:$0xff] %v608_v42  ;;  %617 = vst [vmem:[%s400_s27 + $0x28] sm:$0xff] %v533_v43  ;;  %v713_v49 = vpop.f32.mrb[4].mxu0 }
 0x181   : > { %619 = vst [vmem:[%s400_s27 + $0x38] sm:$0xff] %v610_v47  ;;  %v714_v50 = vadd.f32 %v713_v49, %v624_v41  ;;  %v790_v51 = vpop.f32.mrb[4].mxu1  ;;  %v715_v52 = vpop.f32.mrb[5].mxu0 }
 0x182   : > { %v791_v53 = vadd.f32 %v790_v51, %v632_v45  ;;  %v716_v54 = vadd.f32 %v715_v52, %v628_v46  ;;  %v792_v55 = vpop.f32.mrb[5].mxu1 }
 0x183   : > { %1325 = shalt.err (!%p1322_p0)
}
 0x184   : > { %s1326_s17 = scalar_lea.hbm %s1768_s23, 1024  ;;  %s1330_s1 = scalar_lea.hbm %s1863_s5, 2048 }
 0x185   : > { %p1327_p2 = scmp.ne.s32.totalorder %s1768_s23, %s1326_s17  ;;  %p1331_p4 = scmp.lt.u32.totalorder %s1768_s23, %s1863_s5 }
 0x186   : > { %p1332_p11 = scmp.lt.u32.totalorder %s1330_s1, %s1326_s17  ;;  %p1334_p10 = scmp.lt.u32.totalorder %s1326_s17, %s1768_s23 }
 0x187   : > { %p1328_p1 = pnand %p1327_p2, %p1912_p13 }
 0x188   : > { %p1333_p5 = por %p1332_p11, %p1331_p4 }
 0x189   : > { %p1329_p7 = pneg %p1328_p1 }
 0x18a   : > { %p1335_p3 = por %p1334_p10, %p1333_p5 }
 0x18c   : > { %p1336_p9 = pnand %p1335_p3, %p1329_p7 }
 0x18e   : > { %1339 = shalt.err (!%p1336_p9)
}
 0x18f   : > { %s1446_s13 = smov 512   ;;  %s1447_s7 = smov 32   ;;  %v793_v56 = vadd.f32 %v792_v55, %v636_v48  ;;  %v719_v57 = vpop.f32.mrb[6].mxu0  ;;  %v796_v59 = vpop.f32.mrb[6].mxu1 }
 0x190   : > { %1109 = dma.vmem_to_hbm [thread:$0]  (%p1912_p13), %s1761_s6, 1024, %s1768_s23, %s810_s26, %s1446_s13, %s1446_s13, %s1447_s7   ;;  %v720_v58 = vadd.f32 %v719_v57, %v624_v41  ;;  %v721_v60 = vpop.f32.mrb[7].mxu0  ;;  %v797_v61 = vadd.f32 %v796_v59, %v632_v45  ;;  %v798_v63 = vpop.f32.mrb[7].mxu1 }
 0x191   : > { %s407_s10 = scalar_lea.vmem [#allocation11], %s1059_s28  ;;  %v722_v62 = vadd.f32 %v721_v60, %v628_v46  ;;  %v799_v0 = vadd.f32 %v798_v63, %v636_v48  ;;  %s1913_s30 = sld [smem:[#allocation25_spill]] }
 0x192   : > { %801 = vst [vmem:[%s407_s10] sm:$0xff] %v714_v50  ;;  %s850_s27 = sshll.u32 %s407_s10, 4  ;;  %803 = vst [vmem:[%s407_s10 + $0x10] sm:$0xff] %v791_v53  ;;  %s815_s23 = scalar_lea.sflag [#allocation12], %s1715_s19  ;;  %s1799_s27 = int_to_ptr.vmem [resolvable:$true] %s850_s27 }
 0x193   : > { %802 = vst [vmem:[%s407_s10 + $0x8] sm:$0xff] %v716_v54  ;;  %804 = vst [vmem:[%s407_s10 + $0x18] sm:$0xff] %v793_v56  ;;  %s1340_s26 = scalar_lea.vmem %s1799_s27, 1024  ;;  %s1448_s29 = smov [#allocation11]  }
 0x194   : > { %805 = vst [vmem:[%s407_s10 + $0x20] sm:$0xff] %v720_v58  ;;  %807 = vst [vmem:[%s407_s10 + $0x30] sm:$0xff] %v797_v61  ;;  %p1341_p6 = scmp.ne.s32.totalorder %s1799_s27, %s1340_s26  ;;  %s1344_s16 = sshll.u32 %s1448_s29, 4  ;;  %s1345_s16 = int_to_ptr.vmem [resolvable:$false] %s1344_s16 }
 0x195   : > { %806 = vst [vmem:[%s407_s10 + $0x28] sm:$0xff] %v722_v62  ;;  %808 = vst [vmem:[%s407_s10 + $0x38] sm:$0xff] %v799_v0  ;;  %s1346_s18 = scalar_lea.vmem %s1345_s16, 2048  ;;  %p1347_p0 = scmp.lt.s32.totalorder %s1799_s27, %s1345_s16 }
 0x196   : > { %p1342_p8 = pnand %p1341_p6, %p1912_p13  ;;  %p1348_p2 = scmp.lt.s32.totalorder %s1346_s18, %s1340_s26 }
 0x197   : > { %s1806_s21 = scalar_lea.hbm %s1913_s30, %s1081_s20 }
 0x198   : > { %p1343_p12 = pneg %p1342_p8  ;;  %p1349_p1 = por %p1348_p2, %p1347_p0 }
 0x19a   : > { %p1350_p7 = pnand %p1349_p1, %p1343_p12 }
 0x19c   : > { %1353 = shalt.err (!%p1350_p7)
}
 0x19d   : > { %s1354_s24 = scalar_lea.hbm %s1806_s21, 1024  ;;  %s1358_s17 = scalar_lea.hbm %s1913_s30, 2048 }
 0x19e   : > { %p1355_p4 = scmp.ne.s32.totalorder %s1806_s21, %s1354_s24  ;;  %p1359_p10 = scmp.lt.u32.totalorder %s1806_s21, %s1913_s30 }
 0x19f   : > { %p1360_p3 = scmp.lt.u32.totalorder %s1358_s17, %s1354_s24  ;;  %p1362_p6 = scmp.lt.u32.totalorder %s1354_s24, %s1806_s21 }
 0x1a0   : > { %p1356_p11 = pnand %p1355_p4, %p1912_p13 }
 0x1a1   : > { %p1361_p9 = por %p1360_p3, %p1359_p10 }
 0x1a2   : > { %p1357_p5 = pneg %p1356_p11 }
 0x1a3   : > { %p1363_p8 = por %p1362_p6, %p1361_p9 }
 0x1a5   : > { %p1364_p12 = pnand %p1363_p8, %p1357_p5 }
 0x1a7   : > { %1367 = shalt.err (!%p1364_p12)
}
 0x1a8   : > { %1110 = dma.vmem_to_hbm [thread:$0]  (%p1912_p13), %s1799_s27, 1024, %s1806_s21, %s815_s23, %s1446_s13, %s1446_s13, %s1447_s7  }
 0x1a9 PF: > { %s1914_s1 = sld [smem:[#allocation18_spill]]  ;;  %s1915_s12 = sld [smem:[#allocation23_spill]] }
 0x1aa   : > { %s1916_s11 = sld [smem:[#allocation20_spill]] }
 0x1af   : > { %s865_s10 = sand.u32 1, %s1914_s1   ;;  %p1917_p0 = scmp.ne.s32.totalorder %s1915_s12, 0 }
 0x1b0   : > { %p1918_p2 = scmp.ge.s32.totalorder %s1916_s11, 2  ;;  %s866_s28 = scalar_lea.sflag [#allocation4], %s865_s10 }
 0x1b2   : > { %p1128_p1 = pnand %p1918_p2, %p1917_p0 }
 0x1b4   : > { %1405 = dma.done.wait (!%p1128_p1), %s866_s28, 1024  }
 0x1b5   : > { %1407 = vsyncadd (!%p1128_p1), %s866_s28, 4294966272  ;;  %s875_s14 = scalar_lea.sflag [#allocation12], %s865_s10 }
 0x1b6   : > { %1409 = dma.done.wait (!%p1128_p1), %s875_s14, 1024  }
 0x1b7   : > { %1411 = vsyncadd (!%p1128_p1), %s875_s14, 4294966272  ;;  %s30_s26 = sadd.s32 1, %s1916_s11   ;;  %s1919_s19 = sld [smem:[#allocation19_spill]] }
 0x1b8   : > { %p27_p7 = scmp.ge.s32.totalorder %s30_s26, 4   ;;  %s1920_s23 = sld [smem:[#allocation22_spill]] }
 0x1b9   : > { %s1921_s13 = sld [smem:[#allocation21_spill]]  ;;  %s1922_s21 = smov %s1418_s22 }
 0x1ba   : > { %s1924_s24 = smov %s1430_s25  ;;  %29 = sbr.rel (!%p27_p7) target bundleno = 14 (0xe), region = 133 }
 0x1bd   : > { %s1923_s22 = smov %s1919_s19 }
 0x1bf   : > { %s1925_s25 = smov %s1921_s13 }
 0x1c1   :  { %880 = vsyncpa [#allocation3], 1 }
 0x1c2   :  { %882 = vsyncpa [#allocation3 + $0x1], 1 }
 0x1c3   :  { %883 = vsyncpa [#allocation6], 1 }
 0x1c4   :  { %885 = vsyncpa [#allocation6 + $0x1], 1 }
 0x1c5   :  { %886 = vsyncpa [#allocation9], 1 }
 0x1c6   :  { %887 = vsyncpa [#allocation4], 1 }
 0x1c7   :  { %889 = vsyncpa [#allocation4 + $0x1], 1 }
 0x1c8   :  { %890 = vsyncpa [#allocation12], 1 }
 0x1c9   :  { %892 = vsyncpa [#allocation12 + $0x1], 1 }

</bundles_post_ra>
